<compile_context>
chip_gen: v7x
topology: tpu7x:2x2x1
jax: 0.10.0
libtpu: 0.0.40
codegen_flags: <defaults>
</compile_context>

<pallas_src>
import functools

import jax
import jax.numpy as jnp
from jax.experimental import pallas as pl
from jax.experimental.pallas import tpu as pltpu


def _pos_embed_kernel(xt_ref, w1_ref, b1_ref, w2_ref, b2_ref, o_ref):
    # xt_ref: (BT, C_in, TN)  x^T tiles: channels on sublanes, points on lanes
    # w1_ref: (D, C_in)       BN-folded first 1x1-conv weight (resident)
    # b1_ref: (D, 1)          BN-folded first bias (f32)
    # w2_ref: (D, D)          second 1x1-conv weight (resident)
    # b2_ref: (D, 1)          second bias (f32)
    # o_ref:  (BT, D, TN)     lane-dense output tiles, written straight into (B, D, N)
    w1 = w1_ref[...]
    b1 = b1_ref[...]
    w2 = w2_ref[...]
    b2 = b2_ref[...]
    bt = o_ref.shape[0]
    # bt is small (<= 16) and static -> unrolled; each iteration is two tiny
    # MXU matmuls + VPU relu on a (D, TN) slab.
    for i in range(bt):
        x = xt_ref[i]  # (C_in, TN), native dtype (no full-tile f32 cast)
        # Conv1d(C_in -> D, k=1) with BN folded in:  h^T = W1' @ x^T + b1'
        h = jnp.dot(w1, x, preferred_element_type=jnp.float32) + b1
        # ReLU, then feed the second matmul in the compute dtype.
        h = jnp.maximum(h, 0.0).astype(w2.dtype)
        # Conv1d(D -> D, k=1):  y^T = W2 @ h^T + b2
        y = jnp.dot(w2, h, preferred_element_type=jnp.float32) + b2
        o_ref[i] = y.astype(o_ref.dtype)


def _choose_tiles(B, N, *, cap_tn=8192, min_tn=1024, min_total_steps=4):
    """Pick (bt, tn): batch-block and point-tile sizes.

    tn: lane-dense point tile (multiple of 128 unless it spans all of N), as
        large as comfortably fits VMEM (<= cap_tn) but small enough that
        B * ceil(N / tn) >= min_total_steps so both v7x TensorCores get work.
    bt: > 1 only in the small-N / large-B regime, to amortize per-grid-step
        overhead; chosen as a divisor of B to avoid ragged batch blocks.
    """
    if N <= min_tn:
        tn = N  # single full-dim tile along points (exempt from the 128 rule)
        bt_target = max(1, min(16, -(-2048 // max(N, 1)), B // min_total_steps))
        bt_target = min(bt_target, B)
        bt = max(d for d in range(1, bt_target + 1) if B % d == 0)
        return bt, tn
    steps_needed = max(1, -(-min_total_steps // B))  # ceil(min_total_steps / B)
    tn = min(cap_tn, -(-N // steps_needed))          # ceil(N / steps_needed)
    tn = max(min_tn, tn)
    if tn >= N:
        return 1, N
    tn = -(-tn // 128) * 128                          # lane-dense multiple of 128
    if tn >= N:
        return 1, N
    return 1, tn


@functools.partial(jax.jit, static_argnames=("out_dtype",))
def position_embedding_learned(xyz, w1, b1, bn_scale, bn_shift, w2, b2,
                               *, out_dtype=None):
    """xyz: (B, N, C_in) -> (B, D, N)  (matches the PyTorch module output).

    out_dtype: optional override (e.g. jnp.bfloat16) to halve output HBM
    traffic on this bandwidth-bound op; default keeps xyz.dtype (exact
    semantics match).
    """
    B, N, C_in = xyz.shape
    D = w1.shape[0]  # w1: (D, C_in) == PyTorch Conv1d weight[:, :, 0]
    out_dtype = xyz.dtype if out_dtype is None else out_dtype

    # Weights in the MXU-native compute dtype; biases stay f32 (added to the
    # f32 accumulator).
    compute_dtype = xyz.dtype if xyz.dtype in (jnp.bfloat16, jnp.float16) else jnp.float32

    # Fold inference-mode BatchNorm into the first conv.
    # TODO(synk): PyTorch training-mode BN (batch statistics + running-stat
    # updates) is not reproduced; inference-mode BN is folded instead.
    w1_f = (w1.astype(jnp.float32) * bn_scale[:, None]).astype(compute_dtype)   # (D, C_in)
    b1_f = (b1 * bn_scale + bn_shift).reshape(D, 1).astype(jnp.float32)
    w2_c = w2.astype(compute_dtype)                                             # (D, D)
    b2_r = b2.reshape(D, 1).astype(jnp.float32)

    # Channels-first input (cheap transpose: C_in values per point).
    xt = xyz.transpose(0, 2, 1)                                                  # (B, C_in, N)

    bt, tn = _choose_tiles(B, N)
    grid = (pl.cdiv(B, bt), pl.cdiv(N, tn))

    return pl.pallas_call(
        _pos_embed_kernel,
        out_shape=jax.ShapeDtypeStruct((B, D, N), out_dtype),
        grid_spec=pltpu.PrefetchScalarGridSpec(
            num_scalar_prefetch=0,
            grid=grid,
            in_specs=[
                pl.BlockSpec((bt, C_in, tn), lambda b, n: (b, 0, n)),  # x^T tiles
                pl.BlockSpec((D, C_in), lambda b, n: (0, 0)),          # W1 (BN-folded)
                pl.BlockSpec((D, 1), lambda b, n: (0, 0)),             # b1 (BN-folded)
                pl.BlockSpec((D, D), lambda b, n: (0, 0)),             # W2
                pl.BlockSpec((D, 1), lambda b, n: (0, 0)),             # b2
            ],
            out_specs=pl.BlockSpec((bt, D, tn), lambda b, n: (b, 0, n)),
        ),
        compiler_params=pltpu.CompilerParams(
            dimension_semantics=("parallel", "parallel")),
    )(xt, w1_f, b1_f, w2_c, b2_r)


def _reference(xyz, w1, b1, bn_scale, bn_shift, w2, b2):
    """Pure-JAX reference of the same math (unfused BN) for correctness check."""
    h = jnp.einsum("bnc,dc->bnd", xyz, w1) + b1
    h = jnp.maximum(h * bn_scale + bn_shift, 0.0)
    y = jnp.einsum("bnd,ed->bne", h, w2) + b2
    return y.transpose(0, 2, 1)


def _make_params(key, C_in, D):
    k = jax.random.split(key, 8)
    # Conv1d(C_in, D, k=1): weight (D, C_in, 1) -> squeeze to (D, C_in); bias (D,)
    w1 = jax.random.normal(k[0], (D, C_in), dtype=jnp.float32) * 0.1
    b1 = jax.random.normal(k[1], (D,), dtype=jnp.float32) * 0.1
    # Conv1d(D, D, k=1)
    w2 = jax.random.normal(k[2], (D, D), dtype=jnp.float32) * 0.1
    b2 = jax.random.normal(k[3], (D,), dtype=jnp.float32) * 0.1
    # BatchNorm1d(D), inference mode (running stats folded into affine).
    eps = 1e-5
    gamma = 1.0 + 0.1 * jax.random.normal(k[4], (D,), dtype=jnp.float32)
    beta = 0.1 * jax.random.normal(k[5], (D,), dtype=jnp.float32)
    running_mean = 0.1 * jax.random.normal(k[6], (D,), dtype=jnp.float32)
    running_var = jnp.abs(jax.random.normal(k[7], (D,), dtype=jnp.float32)) + 0.5
    bn_scale = gamma / jnp.sqrt(running_var + eps)
    bn_shift = beta - running_mean * bn_scale
    return w1, b1, bn_scale, bn_shift, w2, b2


if __name__ == "__main__":
    key = jax.random.PRNGKey(0)
    kp, kx1, kx2, kx3 = jax.random.split(key, 4)

    C_in, D = 4, 32
    params = _make_params(kp, C_in, D)

    # Primary small-shape check (B=2, N=16 points, 4 coords, D=32).
    xyz = jax.random.normal(kx1, (2, 16, C_in), dtype=jnp.float32)
    out = jax.block_until_ready(position_embedding_learned(xyz, *params))
    ref = _reference(xyz, *params)
    assert out.shape == (2, D, 16), out.shape
    assert jnp.allclose(out, ref, atol=1e-4, rtol=1e-4), "mismatch (B=2, N=16)"

    # Exercise the large-N path: B=1, N=1500 -> tn=1024, cdiv grid with a
    # ragged (partially written) last tile and >=2 parallel grid steps.
    xyz2 = jax.random.normal(kx2, (1, 1500, C_in), dtype=jnp.float32)
    out2 = jax.block_until_ready(position_embedding_learned(xyz2, *params))
    ref2 = _reference(xyz2, *params)
    assert out2.shape == (1, D, 1500), out2.shape
    assert jnp.allclose(out2, ref2, atol=1e-4, rtol=1e-4), "mismatch (B=1, N=1500)"

    # Exercise the small-N / larger-B path: B=8, N=96 -> bt=2 batches/grid step.
    xyz3 = jax.random.normal(kx3, (8, 96, C_in), dtype=jnp.float32)
    out3 = jax.block_until_ready(position_embedding_learned(xyz3, *params))
    ref3 = _reference(xyz3, *params)
    assert out3.shape == (8, D, 96), out3.shape
    assert jnp.allclose(out3, ref3, atol=1e-4, rtol=1e-4), "mismatch (B=8, N=96)"

    print("KERNEL_OK")
</pallas_src>

<mosaic_0001>
module attributes {stable_mosaic.version = 11 : i64} {
  func.func @_pos_embed_kernel(%arg0: i32, %arg1: i32, %arg2: memref<1x4x16xf32, #tpu.memory_space<vmem>>, %arg3: memref<32x4xf32, #tpu.memory_space<vmem>>, %arg4: memref<32x1xf32, #tpu.memory_space<vmem>>, %arg5: memref<32x32xf32, #tpu.memory_space<vmem>>, %arg6: memref<32x1xf32, #tpu.memory_space<vmem>>, %arg7: memref<1x32x16xf32, #tpu.memory_space<vmem>>) attributes {dimension_semantics = [#tpu.dimension_semantics<parallel>, #tpu.dimension_semantics<parallel>], iteration_bounds = array<i64: 2, 1>, scalar_prefetch = 0 : i64, scratch_operands = 0 : i64, tpu.core_type = #tpu.core_type<tc>, window_params = [{transform_indices = @transform_0, window_bounds = array<i64: 1, 4, 16>}, {pipeline_mode = #tpu.pipeline_mode<synchronous>, transform_indices = @transform_1, window_bounds = array<i64: 32, 4>}, {pipeline_mode = #tpu.pipeline_mode<synchronous>, transform_indices = @transform_2, window_bounds = array<i64: 32, 1>}, {pipeline_mode = #tpu.pipeline_mode<synchronous>, transform_indices = @transform_3, window_bounds = array<i64: 32, 32>}, {pipeline_mode = #tpu.pipeline_mode<synchronous>, transform_indices = @transform_4, window_bounds = array<i64: 32, 1>}, {transform_indices = @transform_5, window_bounds = array<i64: 1, 32, 16>}]} {
    %c0 = arith.constant 0 : index
    %c0_0 = arith.constant 0 : index
    %0 = vector.load %arg3[%c0, %c0_0] : memref<32x4xf32, #tpu.memory_space<vmem>>, vector<32x4xf32>
    %c0_1 = arith.constant 0 : index
    %c0_2 = arith.constant 0 : index
    %1 = vector.load %arg4[%c0_1, %c0_2] : memref<32x1xf32, #tpu.memory_space<vmem>>, vector<32x1xf32>
    %c0_3 = arith.constant 0 : index
    %c0_4 = arith.constant 0 : index
    %2 = vector.load %arg5[%c0_3, %c0_4] : memref<32x32xf32, #tpu.memory_space<vmem>>, vector<32x32xf32>
    %c0_5 = arith.constant 0 : index
    %c0_6 = arith.constant 0 : index
    %3 = vector.load %arg6[%c0_5, %c0_6] : memref<32x1xf32, #tpu.memory_space<vmem>>, vector<32x1xf32>
    %c0_7 = arith.constant 0 : index
    %c0_8 = arith.constant 0 : index
    %c0_9 = arith.constant 0 : index
    %4 = vector.load %arg2[%c0_7, %c0_8, %c0_9] : memref<1x4x16xf32, #tpu.memory_space<vmem>>, vector<1x4x16xf32>
    %5 = vector.shape_cast %4 : vector<1x4x16xf32> to vector<4x16xf32>
    %cst = arith.constant dense<0.000000e+00> : vector<32x16xf32>
    %6 = tpu.matmul %0, %5, %cst {dimension_numbers = #tpu.dot_dimension_numbers<[1], [0], [0], [1], [0, 0, 1, 1], [], []>} : vector<32x4xf32>, vector<4x16xf32>, vector<32x16xf32> -> vector<32x16xf32>
    %7 = vector.broadcast %1 : vector<32x1xf32> to vector<32x16xf32>
    %8 = arith.addf %6, %7 : vector<32x16xf32>
    %cst_10 = arith.constant 0.000000e+00 : f32
    %9 = vector.broadcast %cst_10 : f32 to vector<32x16xf32>
    %10 = arith.maximumf %8, %9 : vector<32x16xf32>
    %cst_11 = arith.constant dense<0.000000e+00> : vector<32x16xf32>
    %11 = tpu.matmul %2, %10, %cst_11 {dimension_numbers = #tpu.dot_dimension_numbers<[1], [0], [0], [1], [0, 0, 1, 1], [], []>} : vector<32x32xf32>, vector<32x16xf32>, vector<32x16xf32> -> vector<32x16xf32>
    %12 = vector.broadcast %3 : vector<32x1xf32> to vector<32x16xf32>
    %13 = arith.addf %11, %12 : vector<32x16xf32>
    %c0_12 = arith.constant 0 : index
    %c0_13 = arith.constant 0 : index
    %c0_14 = arith.constant 0 : index
    %14 = vector.load %arg7[%c0_12, %c0_13, %c0_14] : memref<1x32x16xf32, #tpu.memory_space<vmem>>, vector<1x32x16xf32>
    %15 = vector.shape_cast %14 : vector<1x32x16xf32> to vector<32x16xf32>
    %16 = vector.shape_cast %13 : vector<32x16xf32> to vector<1x32x16xf32>
    tpu.vector_store %arg7[%c0_12, %c0_13, %c0_14], %16 {strides = array<i32>} : memref<1x32x16xf32, #tpu.memory_space<vmem>>, vector<1x32x16xf32>,
    return
  }
  func.func @transform_0(%arg0: i32, %arg1: i32) -> (i32, i32, i32) {
    %c0_i32 = arith.constant 0 : i32
    %c0_i32_0 = arith.constant 0 : i32
    return %arg0, %c0_i32, %arg1 : i32, i32, i32
  }
  func.func @transform_1(%arg0: i32, %arg1: i32) -> (i32, i32) {
    %c0_i32 = arith.constant 0 : i32
    %c0_i32_0 = arith.constant 0 : i32
    %c0_i32_1 = arith.constant 0 : i32
    return %c0_i32, %c0_i32_0 : i32, i32
  }
  func.func @transform_2(%arg0: i32, %arg1: i32) -> (i32, i32) {
    %c0_i32 = arith.constant 0 : i32
    %c0_i32_0 = arith.constant 0 : i32
    %c0_i32_1 = arith.constant 0 : i32
    return %c0_i32, %c0_i32_0 : i32, i32
  }
  func.func @transform_3(%arg0: i32, %arg1: i32) -> (i32, i32) {
    %c0_i32 = arith.constant 0 : i32
    %c0_i32_0 = arith.constant 0 : i32
    %c0_i32_1 = arith.constant 0 : i32
    return %c0_i32, %c0_i32_0 : i32, i32
  }
  func.func @transform_4(%arg0: i32, %arg1: i32) -> (i32, i32) {
    %c0_i32 = arith.constant 0 : i32
    %c0_i32_0 = arith.constant 0 : i32
    %c0_i32_1 = arith.constant 0 : i32
    return %c0_i32, %c0_i32_0 : i32, i32
  }
  func.func @transform_5(%arg0: i32, %arg1: i32) -> (i32, i32, i32) {
    %c0_i32 = arith.constant 0 : i32
    %c0_i32_0 = arith.constant 0 : i32
    return %arg0, %c0_i32, %arg1 : i32, i32, i32
  }
}

</mosaic_0001>

<bundles_post_ra>
// kernel: position_embedding_learned.1
= control target key start
LH: loop header
LB: loop body
LE: loop exit
PB: predicated region body
PF: predicated region fallthrough
CT: control target
= control target key end

     0   :  { %s748_s18 = smov 0   ;;  %s750_s19 = smov 0   ;;  %s841_s0 = inlined_call_operand.vmem [shape: f32[2,4,16], index: 0, kind: input, shape index: {}]   ;;  %s842_s1 = inlined_call_operand.vmem [shape: f32[32,4], index: 1, kind: input, shape index: {}]   ;;  %s843_s2 = inlined_call_operand.vmem [shape: f32[32,1], index: 2, kind: input, shape index: {}]   ;;  %s844_s3 = inlined_call_operand.vmem [shape: f32[32,32], index: 3, kind: input, shape index: {}]   ;;  %s845_s4 = inlined_call_operand.vmem [shape: f32[32,1], index: 4, kind: input, shape index: {}]   ;;  %s846_s5 = inlined_call_operand.vmem [shape: f32[2,32,16], index: 5, kind: output, shape index: {}]  }
   0x1   :  { %s752_s20 = smov 0  }
   0x2 LB: > { %s27_s21 = sadd.s32 1, %s711_s19  ;;  %p603_p0 = scmp.ge.s32.totalorder %s715_s20, 1  ;;  %s715_s20 = sphi %s752_s20, %s15_s20   ;;  %s711_s19 = sphi %s750_s19, %s848_s19   ;;  %s707_s18 = sphi %s748_s18, %s847_s18  }
   0x3   : > { %p29_p1 = scmp.ge.s32.totalorder %s27_s21, 2  ;;  %p205_p2 = scmp.lt.s32.totalorder %s715_s20, 3 }
   0x5   : > { %s850_s21 = smov (%p29_p1, %s27_s21), 0  ;;  %p206_p3 = pnand %p603_p0, %p205_p2 }
   0x6   : > { %p238_p4 = scmp.lt.s32.totalorder (!%p206_p3), %s707_s18, 1  ;;  %v253_v0 = vld [vmem:[%s842_s1] sm:$0xff] (!%p206_p3)  ;;  %vm290_vm0 = vcmask (!%p206_p3), 31744   ;;  %v259_v2 = vld [vmem:[%s843_s2 + $0x10] sm:$0xff] (!%p206_p3)  ;;  %v717_v3 = vmov (!%p206_p3), 0   ;;  %vm303_vm1 = vcmask (!%p206_p3), 1043456  }
   0x7   : > { %209 = sbr.rel (%p206_p3) target bundleno = 463 (0x1cf), region = 40  ;;  %634 = vmatprep.mubr.msk.f32.mxu0 (!%p206_p3), %vm290_vm0, %v253_v0  ;;  %v257_v1 = vld [vmem:[%s843_s2] sm:$0xff] (!%p206_p3)  ;;  %691 = vset.pattern.permute.xlu0 (!%p206_p3), %v717_v3  ;;  %v258_v4 = vld [vmem:[%s843_s2 + $0x8] sm:$0xff] (!%p206_p3)  ;;  %v260_v5 = vld [vmem:[%s843_s2 + $0x18] sm:$0xff] (!%p206_p3)  ;;  %vm416_vm2 = vcmask (!%p206_p3), 261120   ;;  %vm514_vm3 = vcmask (!%p206_p3), 130048  }
   0x8   : > { %692 = vset.pattern.permute.xlu1 (!%p206_p3), %v717_v3  ;;  %272 = vperm.xlu0 (!%p206_p3), %691, %v257_v1   ;;  %v254_v7 = vld [vmem:[%s842_s1 + $0x8] sm:$0xff] (!%p206_p3)  ;;  %v255_v8 = vld [vmem:[%s842_s1 + $0x10] sm:$0xff] (!%p206_p3)  ;;  %v265_v9 = vld [vmem:[%s845_s4] sm:$0xff] (!%p206_p3) }
   0x9   : > { %282 = vperm.xlu1 (!%p206_p3), %692, %v259_v2   ;;  %v266_v10 = vld [vmem:[%s845_s4 + $0x8] sm:$0xff] (!%p206_p3)  ;;  %v256_v11 = vld [vmem:[%s842_s1 + $0x18] sm:$0xff] (!%p206_p3)  ;;  %v267_v12 = vld [vmem:[%s845_s4 + $0x10] sm:$0xff] (!%p206_p3) }
   0xa   : > { %v268_v13 = vld [vmem:[%s845_s4 + $0x18] sm:$0xff] (!%p206_p3)  ;;  %v261_v14 = vld [vmem:[%s844_s3] sm:$0xff] (!%p206_p3)  ;;  %v263_v15 = vld [vmem:[%s844_s3 + $0x10] sm:$0xff] (!%p206_p3) }
   0xb   : > { %651 = vmatprep.mubr.msk.f32.mxu1 (!%p206_p3), %vm416_vm2, %v263_v15  ;;  %v262_v34 = vld [vmem:[%s844_s3 + $0x8] sm:$0xff] (!%p206_p3)  ;;  %v264_v35 = vld [vmem:[%s844_s3 + $0x18] sm:$0xff] (!%p206_p3) }
   0xc   : > { %277 = vperm.xlu0 (!%p206_p3), %691, %v258_v4  }
   0xd   : > { %287 = vperm.xlu1 (!%p206_p3), %692, %v260_v5  }
   0xe   : > { %s852_s18 = smov (!%p238_p4, %s707_s18), 1 }
   0xf   : > { %s604_s28 = sshll.u32 %s852_s18, 2  ;;  %s618_s12 = sshll.u32 %s852_s18, 5 }
  0x10   : > { %s244_s8 = scalar_lea.vmem %s841_s0, %s604_s28  ;;  %398 = vperm.xlu0 %691, %v265_v9   ;;  %s252_s15 = scalar_lea.vmem %s846_s5, %s618_s12 }
  0x11   : > { %v269_v6 = vld [vmem:[%s244_s8] sm:$0xf]  ;;  %403 = vperm.xlu1 %692, %v266_v10  }
  0x12   : > { %632 = vmatprep.subr.msk.mxu0 %vm303_vm1, %v269_v6 }
  0x13   : > { %633 = vmatpush3.msk.msra.mxu0 %vm303_vm1, %v269_v6 }
  0x14   : > { %635 = vmatmul.mubr.msk.f32.vlgmr.msra.gmra.mrb[0].mxu0 %vm290_vm0, %v254_v7  ;;  %408 = vperm.xlu0 %691, %v267_v12  }
  0x15   : > { %637 = vmatprep.mubr.msk.f32.mxu0 %vm290_vm0, %v255_v8  ;;  %413 = vperm.xlu1 %692, %v268_v13  }
  0x18   : > { %638 = vmatmul.mubr.msk.f32.gmra.mrb[2].mxu0 %vm290_vm0, %v256_v11 }
  0x19   : > { %648 = vmatprep.mubr.msk.f32.mxu0 %vm416_vm2, %v261_v14 }
  0x87   : > { %v273_v16 = vpop.permute.xlu0 %272 }
  0x88   : > { %v283_v17 = vpop.permute.xlu1 %282 }
  0x8b   : > { %v278_v18 = vpop.permute.xlu0 %277 }
  0x8c   : > { %v288_v24 = vpop.permute.xlu1 %287 }
  0x8f   : > { %v399_v36 = vpop.permute.xlu0 %398 }
  0x90   : > { %v404_v37 = vpop.permute.xlu1 %403 }
  0x93   : > { %v409_v38 = vpop.permute.xlu0 %408 }
  0x94   : > { %v414_v39 = vpop.permute.xlu1 %413 }
  0xe7   : > { %v636_v19 = vpop.f32.mrb[0].mxu0 }
  0xe8   : > { %v379_v20 = vadd.f32 %v636_v19, %v278_v18  ;;  %v373_v21 = vpop.f32.mrb[1].mxu0 }
  0xe9   : > { %v374_v22 = vadd.f32 %v373_v21, %v273_v16 }
  0xea   : > { %v393_v23 = vmax.f32 %v379_v20, 0.0 }
  0xeb   : > { %v392_v25 = vmax.f32 %v374_v22, 0.0  ;;  %v639_v26 = vpop.f32.mrb[2].mxu0 }
  0xec   : > { %v389_v27 = vadd.f32 %v639_v26, %v288_v24  ;;  %v383_v28 = vpop.f32.mrb[3].mxu0 }
  0xed   : > { %v654_v29 = vpack.c.bf16 %v393_v23, %v392_v25  ;;  %v384_v30 = vadd.f32 %v383_v28, %v283_v17 }
  0xee   : > { %v395_v31 = vmax.f32 %v389_v27, 0.0 }
  0xef   : > { %v394_v32 = vmax.f32 %v384_v30, 0.0  ;;  %655 = vmatprep.subr.bf16.mxu0 %v654_v29  ;;  %662 = vmatprep.subr.bf16.mxu1 %v654_v29 }
  0xf0   : > { %657 = vmatpush3.bf16.msra.mxu0 %v654_v29  ;;  %664 = vmatpush3.bf16.msra.mxu1 %v654_v29 }
  0xf1   : > { %v658_v33 = vpack.c.bf16 %v395_v31, %v394_v32 }
  0xf3   : > { %659 = vmatprep.subr.bf16.mxu0 %v658_v33  ;;  %663 = vmatprep.subr.bf16.mxu1 %v658_v33 }
  0xf4   : > { %661 = vmatpush3.bf16.msra.mxu0 %v658_v33  ;;  %665 = vmatpush3.bf16.msra.mxu1 %v658_v33 }
  0xf7   : > { %649 = vmatmul.mubr.msk.f32.vlgmr.msra.gmra.mrb[4].mxu0 %vm416_vm2, %v262_v34  ;;  %652 = vmatmul.mubr.msk.f32.vlgmr.msra.gmra.mrb[0].mxu1 %vm416_vm2, %v264_v35 }
 0x1ca   : > { %v650_v40 = vpop.f32.mrb[4].mxu0  ;;  %v653_v41 = vpop.f32.mrb[0].mxu1 }
 0x1cb   : > { %v501_v42 = vadd.f32 %v650_v40, %v404_v37  ;;  %v511_v43 = vadd.f32 %v653_v41, %v414_v39  ;;  %v495_v44 = vpop.f32.mrb[5].mxu0  ;;  %v505_v45 = vpop.f32.mrb[1].mxu1 }
 0x1cc   : > { %v496_v46 = vadd.f32 %v495_v44, %v399_v36  ;;  %v506_v47 = vadd.f32 %v505_v45, %v409_v38 }
 0x1cd   : > { %516 = vst.msk [vmem:[%s252_s15 + $0x8] sm:$0xff] %vm514_vm3, %v501_v42  ;;  %518 = vst.msk [vmem:[%s252_s15 + $0x18] sm:$0xff] %vm514_vm3, %v511_v43 }
 0x1ce   : > { %515 = vst.msk [vmem:[%s252_s15] sm:$0xff] %vm514_vm3, %v496_v46  ;;  %517 = vst.msk [vmem:[%s252_s15 + $0x10] sm:$0xff] %vm514_vm3, %v506_v47 }
 0x1cf PF: > { %s15_s20 = sadd.s32 1, %s715_s20   ;;  %s847_s18 = smov %s711_s19 }
 0x1d0   : > { %p12_p5 = scmp.ge.s32.totalorder %s15_s20, 4   ;;  %s848_s19 = smov %s850_s21 }
 0x1d2   :  { %14 = sbr.rel (!%p12_p5) target bundleno = 2 (0x2), region = 70 }

</bundles_post_ra>
